<compile_context>
chip_gen: v5e
topology: v5e:2x2
jax: 0.10.0
libtpu: 0.0.40
codegen_flags: <defaults>
</compile_context>

<pallas_src>
import functools

import numpy as np

import jax
import jax.numpy as jnp
from jax.experimental import pallas as pl
from jax.experimental.pallas import tpu as pltpu


# ----------------------------------------------------------------------------
# Kernel
# ----------------------------------------------------------------------------
def residual_attention_block_kernel(
    x_ref,                    # (NB*L, D)   NB batch columns, flattened over (batch, seq)
    ln1_w_ref, ln1_b_ref,     # (1, D)  fp32
    in_w_ref, in_b_ref,       # (D, 3D) bf16 (head-permuted, q-scaled), (1, 3D) fp32
    out_w_ref, out_b_ref,     # (D, D)  bf16, (1, D)  fp32
    ln2_w_ref, ln2_b_ref,     # (1, D)  fp32
    fc_w_ref, fc_b_ref,       # (D, FF) bf16, (1, FF) fp32
    proj_w_ref, proj_b_ref,   # (FF, D) bf16, (1, D)  fp32
    o_ref,                    # (NB*L, D)
    *, nb, seq_len, n_head, eps, ff_chunk):
    M, D = x_ref.shape                      # M = nb * seq_len
    L = seq_len
    H = n_head
    hd = D // H
    FF = fc_w_ref.shape[-1]
    f32 = jnp.float32
    cdt = jnp.bfloat16                      # MXU operand dtype

    x = x_ref[...].astype(f32)              # fp32 residual stream (LayerNorm subclass)

    def layernorm(v, w_ref, b_ref):         # fp32 stats (v5e has no bf16 VPU/EUP)
        mu = jnp.mean(v, axis=-1, keepdims=True)
        var = jnp.mean(jnp.square(v - mu), axis=-1, keepdims=True)
        return (v - mu) * jax.lax.rsqrt(var + eps) * w_ref[0] + b_ref[0]

    # ---- ln_1 + fused QKV projection (M = NB*L rows feeding the MXU) ----------
    h = layernorm(x, ln1_w_ref, ln1_b_ref)
    qkv = jnp.dot(h.astype(cdt), in_w_ref[...],
                  preferred_element_type=f32) + in_b_ref[0]            # (M, 3D) f32
    qkv3 = qkv.reshape(nb, L, 3 * D)                                   # (NB, L, 3D)

    # in_proj columns were pre-permuted to per-head [q|k|v] slabs of width 3*hd,
    # so one concat pass gives all per-(head,batch) data; q/k/v are lane slices.
    qkvh = jnp.concatenate(
        [qkv3[:, :, i * 3 * hd:(i + 1) * 3 * hd].astype(cdt) for i in range(H)],
        axis=0)                                                        # (H*NB, L, 3hd)
    qh = qkvh[:, :, :hd]           # query scale already folded into in_proj weights
    kh = qkvh[:, :, hd:2 * hd]
    vh = qkvh[:, :, 2 * hd:]

    # ---- causal multi-head attention (heads + batch as one einsum batch dim) --
    row = jax.lax.broadcasted_iota(jnp.int32, (L, L), 0)
    col = jax.lax.broadcasted_iota(jnp.int32, (L, L), 1)
    causal = col > row                                                 # above diagonal

    s = jnp.einsum("zld,zmd->zlm", qh, kh,
                   preferred_element_type=f32)                         # (H*NB, L, L)
    s = jnp.where(causal, jnp.float32(-1e30), s)                       # finite mask
    s = s - jnp.max(s, axis=-1, keepdims=True)
    p = jnp.exp(s)                                                     # fp32 softmax
    p = p * pl.reciprocal(jnp.sum(p, axis=-1, keepdims=True), approx=True)

    o = jnp.einsum("zlm,zmd->zld", p.astype(cdt), vh,
                   preferred_element_type=f32)                         # (H*NB, L, hd)
    attn = jnp.concatenate(
        [o[i * nb:(i + 1) * nb] for i in range(H)], axis=-1)           # (NB, L, D)
    attn = attn.reshape(M, D)
    attn = jnp.dot(attn.astype(cdt), out_w_ref[...],
                   preferred_element_type=f32) + out_b_ref[0]

    x = x + attn                                                       # first residual

    # ---- ln_2 + MLP (c_fc -> QuickGELU -> c_proj), tiled over the FF axis -----
    h2 = layernorm(x, ln2_w_ref, ln2_b_ref).astype(cdt)
    m = jnp.zeros((M, D), f32)
    for c in range(FF // ff_chunk):                                    # static trip count
        lo = c * ff_chunk
        f = jnp.dot(h2, fc_w_ref[:, lo:lo + ff_chunk],
                    preferred_element_type=f32) + fc_b_ref[0, lo:lo + ff_chunk]
        f = f * jax.nn.sigmoid(1.702 * f)                              # QuickGELU, fp32
        m = m + jnp.dot(f.astype(cdt), proj_w_ref[lo:lo + ff_chunk, :],
                        preferred_element_type=f32)
    m = m + proj_b_ref[0]

    o_ref[...] = (x + m).astype(o_ref.dtype)                           # second residual


# ----------------------------------------------------------------------------
# One-time weight preparation (cache the result; do NOT redo per forward call)
# ----------------------------------------------------------------------------
def prepare_block_params(params, n_head):
    """Transpose Linear weights to (in, out), fold the 1/sqrt(head_dim) query scale
    into the Q columns of in_proj, permute in_proj output columns to per-head
    [q|k|v] slabs, and cast matmul operands to bfloat16 (biases/LN stay fp32)."""
    f32 = jnp.float32
    cdt = jnp.bfloat16
    D = params["ln1_w"].shape[-1]
    H = n_head
    hd = D // H
    scale = float(hd) ** -0.5

    in_w = params["in_proj_w"].T.astype(f32)            # (D, 3D)
    in_b = params["in_proj_b"].astype(f32)               # (1, 3D)
    in_w = in_w.at[:, :D].multiply(scale)                # fold query scale into weights
    in_b = in_b.at[:, :D].multiply(scale)

    # per-head [q | k | v] column permutation
    perm = np.concatenate(
        [np.concatenate([np.arange(h * hd, (h + 1) * hd) + blk * D
                         for blk in range(3)]) for h in range(H)])
    in_w = in_w[:, perm]
    in_b = in_b[:, perm]

    return {
        "ln1_w": params["ln1_w"].astype(f32), "ln1_b": params["ln1_b"].astype(f32),
        "in_w": in_w.astype(cdt), "in_b": in_b,
        "out_w": params["out_proj_w"].T.astype(cdt),
        "out_b": params["out_proj_b"].astype(f32),
        "ln2_w": params["ln2_w"].astype(f32), "ln2_b": params["ln2_b"].astype(f32),
        "fc_w": params["fc_w"].T.astype(cdt), "fc_b": params["fc_b"].astype(f32),
        "proj_w": params["proj_w"].T.astype(cdt), "proj_b": params["proj_b"].astype(f32),
    }


# ----------------------------------------------------------------------------
# Block / chunk size selection
# ----------------------------------------------------------------------------
def _pick_batch_block(n, batch_block):
    """NB must divide N and (be a multiple of 8 or equal N) so the (NB*L, D) block
    satisfies the TPU (8,128) block constraint without padded garbage columns.
    Prefer >= 2 grid blocks so both v7x TensorCores get work."""
    if n < 8 or n % 8 != 0:
        return n                                   # small / odd batch: one full block
    best = n
    for nb in range(8, min(batch_block, n) + 1, 8):
        if n % nb == 0:
            best = nb
    if best == n and n >= 16 and (n // 2) % 8 == 0:
        best = n // 2                              # give the second TC at least one block
    return best


def _pick_ff_chunk(ff):
    if ff <= 1024:
        return ff
    for c in (1024, 896, 768, 640, 512, 384, 256, 128):
        if ff % c == 0:
            return c
    return ff


# ----------------------------------------------------------------------------
# Wrapper
# ----------------------------------------------------------------------------
def residual_attention_block(x, prepped, *, n_head, eps=1e-5, batch_block=8):
    L, N, D = x.shape
    H = n_head
    FF = prepped["fc_w"].shape[-1]

    NB = _pick_batch_block(N, batch_block)
    n_blocks = N // NB
    ff_chunk = _pick_ff_chunk(FF)
    M = NB * L

    # (L, N, D) -> (N, L, D) -> (N*L, D): each grid block is one contiguous HBM slab.
    x2 = jnp.transpose(x, (1, 0, 2)).reshape(N * L, D)

    w_args = [
        prepped["ln1_w"], prepped["ln1_b"],
        prepped["in_w"], prepped["in_b"],
        prepped["out_w"], prepped["out_b"],
        prepped["ln2_w"], prepped["ln2_b"],
        prepped["fc_w"], prepped["fc_b"],
        prepped["proj_w"], prepped["proj_b"],
    ]

    def _weight_spec(w):
        nd = w.ndim
        idx = lambda n, nd=nd: (0,) * nd
        try:
            # constant-index weights only need a single VMEM buffer (no double-buffering)
            return pl.BlockSpec(w.shape, idx, pipeline_mode=pl.Buffered(1))
        except (TypeError, ValueError):
            return pl.BlockSpec(w.shape, idx)

    x_spec = pl.BlockSpec((M, D), lambda n: (n, 0))
    out_spec = pl.BlockSpec((M, D), lambda n: (n, 0))
    w_specs = [_weight_spec(w) for w in w_args]

    # ---- VMEM budget: single-buffered weights + double-buffered io blocks + activations
    weight_bytes = sum(int(np.prod(w.shape)) * w.dtype.itemsize for w in w_args)
    io_bytes = 2 * 2 * M * D * x.dtype.itemsize
    act_bytes = (6 * M * D * 4 + M * 3 * D * 6
                 + H * NB * L * L * 6 + M * ff_chunk * 6)
    try:
        vmem_cap = int(pltpu.get_tpu_info().vmem_capacity_bytes)
    except Exception:
        vmem_cap = 64 * 1024 * 1024
    vmem_limit = int(min(max(weight_bytes + io_bytes + act_bytes + (8 << 20), 32 << 20),
                         int(0.9 * vmem_cap)))

    kern = functools.partial(residual_attention_block_kernel,
                             nb=NB, seq_len=L, n_head=n_head, eps=eps,
                             ff_chunk=ff_chunk)

    out = pl.pallas_call(
        kern,
        out_shape=jax.ShapeDtypeStruct((N * L, D), x.dtype),
        grid=(n_blocks,),
        in_specs=[x_spec] + w_specs,
        out_specs=out_spec,
        compiler_params=pltpu.CompilerParams(
            dimension_semantics=("parallel",),      # sharded across TCs on v7x
            vmem_limit_bytes=vmem_limit),
    )(x2, *w_args)

    return jnp.transpose(out.reshape(N, L, D), (1, 0, 2))   # back to (L, N, D)


# ----------------------------------------------------------------------------
# Deterministic parameter init (PyTorch shapes) + pure-JAX fp32 reference
# ----------------------------------------------------------------------------
def make_params(key, d_model, ff_dim):
    ks = jax.random.split(key, 8)
    f32 = jnp.float32
    return {
        "ln1_w": jnp.ones((1, d_model), f32),
        "ln1_b": jnp.zeros((1, d_model), f32),
        "in_proj_w": 0.02 * jax.random.normal(ks[0], (3 * d_model, d_model), f32),
        "in_proj_b": 0.01 * jax.random.normal(ks[1], (1, 3 * d_model), f32),
        "out_proj_w": 0.02 * jax.random.normal(ks[2], (d_model, d_model), f32),
        "out_proj_b": 0.01 * jax.random.normal(ks[3], (1, d_model), f32),
        "ln2_w": jnp.ones((1, d_model), f32),
        "ln2_b": jnp.zeros((1, d_model), f32),
        "fc_w": 0.02 * jax.random.normal(ks[4], (ff_dim, d_model), f32),
        "fc_b": 0.01 * jax.random.normal(ks[5], (1, ff_dim), f32),
        "proj_w": 0.02 * jax.random.normal(ks[6], (d_model, ff_dim), f32),
        "proj_b": 0.01 * jax.random.normal(ks[7], (1, d_model), f32),
    }


def reference(x, p, n_head, eps=1e-5):
    """Pure-JAX fp32 mirror of the PyTorch forward (for correctness check)."""
    L, N, D = x.shape
    hd = D // n_head

    def ln(v, w, b):
        mu = v.mean(-1, keepdims=True)
        var = ((v - mu) ** 2).mean(-1, keepdims=True)
        return (v - mu) / jnp.sqrt(var + eps) * w[0] + b[0]

    h = ln(x, p["ln1_w"], p["ln1_b"])
    qkv = h @ p["in_proj_w"].T + p["in_proj_b"][0]
    q, k, v = qkv[..., :D] * hd ** -0.5, qkv[..., D:2 * D], qkv[..., 2 * D:]

    def split_heads(t):
        return t.reshape(L, N, n_head, hd).transpose(1, 2, 0, 3)  # (N,H,L,hd)

    qh, kh, vh = split_heads(q), split_heads(k), split_heads(v)
    scores = jnp.einsum("nhld,nhmd->nhlm", qh, kh)
    mask = jnp.triu(jnp.full((L, L), -jnp.inf, jnp.float32), 1)
    scores = scores + mask
    pattn = jax.nn.softmax(scores, axis=-1)
    o = jnp.einsum("nhlm,nhmd->nhld", pattn, vh)
    o = o.transpose(2, 0, 1, 3).reshape(L, N, D)
    o = o @ p["out_proj_w"].T + p["out_proj_b"][0]
    x = x + o

    h = ln(x, p["ln2_w"], p["ln2_b"])
    f = h @ p["fc_w"].T + p["fc_b"][0]
    f = f * jax.nn.sigmoid(1.702 * f)
    m = f @ p["proj_w"].T + p["proj_b"][0]
    return x + m


# ----------------------------------------------------------------------------
if __name__ == "__main__":
    seq_len, batch, d_model, n_head, ff_dim = 8, 2, 32, 4, 64
    eps = 1e-5

    key = jax.random.PRNGKey(0)
    k_x, k_p = jax.random.split(key)
    x = jax.random.normal(k_x, (seq_len, batch, d_model), jnp.float32)
    params = make_params(k_p, d_model, ff_dim)

    prepped = prepare_block_params(params, n_head)   # one-time weight prep (cacheable)
    out = residual_attention_block(x, prepped, n_head=n_head, eps=eps)
    out = jax.block_until_ready(out)

    ref = reference(x, params, n_head, eps)
    assert out.shape == (seq_len, batch, d_model)
    # bf16 MXU operands -> small drift vs. the fp32 reference; 1e-2 tolerance.
    assert jnp.allclose(out, ref, rtol=1e-2, atol=1e-2), (
        float(jnp.max(jnp.abs(out - ref))))

    print("KERNEL_OK")
</pallas_src>

<mosaic_0001>
module attributes {stable_mosaic.version = 11 : i64} {
  func.func @residual_attention_block_kernel(%arg0: i32, %arg1: memref<16x32xf32, #tpu.memory_space<vmem>>, %arg2: memref<1x32xf32, #tpu.memory_space<vmem>>, %arg3: memref<1x32xf32, #tpu.memory_space<vmem>>, %arg4: memref<32x96xbf16, #tpu.memory_space<vmem>>, %arg5: memref<1x96xf32, #tpu.memory_space<vmem>>, %arg6: memref<32x32xbf16, #tpu.memory_space<vmem>>, %arg7: memref<1x32xf32, #tpu.memory_space<vmem>>, %arg8: memref<1x32xf32, #tpu.memory_space<vmem>>, %arg9: memref<1x32xf32, #tpu.memory_space<vmem>>, %arg10: memref<32x64xbf16, #tpu.memory_space<vmem>>, %arg11: memref<1x64xf32, #tpu.memory_space<vmem>>, %arg12: memref<64x32xbf16, #tpu.memory_space<vmem>>, %arg13: memref<1x32xf32, #tpu.memory_space<vmem>>, %arg14: memref<16x32xf32, #tpu.memory_space<vmem>>) attributes {dimension_semantics = [#tpu.dimension_semantics<parallel>], iteration_bounds = array<i64: 1>, scalar_prefetch = 0 : i64, scratch_operands = 0 : i64, tpu.core_type = #tpu.core_type<tc>, window_params = [{transform_indices = @transform_0, window_bounds = array<i64: 16, 32>}, {pipeline_mode = #tpu.pipeline_mode<synchronous>, transform_indices = @transform_1, window_bounds = array<i64: 1, 32>}, {pipeline_mode = #tpu.pipeline_mode<synchronous>, transform_indices = @transform_2, window_bounds = array<i64: 1, 32>}, {pipeline_mode = #tpu.pipeline_mode<synchronous>, transform_indices = @transform_3, window_bounds = array<i64: 32, 96>}, {pipeline_mode = #tpu.pipeline_mode<synchronous>, transform_indices = @transform_4, window_bounds = array<i64: 1, 96>}, {pipeline_mode = #tpu.pipeline_mode<synchronous>, transform_indices = @transform_5, window_bounds = array<i64: 32, 32>}, {pipeline_mode = #tpu.pipeline_mode<synchronous>, transform_indices = @transform_6, window_bounds = array<i64: 1, 32>}, {pipeline_mode = #tpu.pipeline_mode<synchronous>, transform_indices = @transform_7, window_bounds = array<i64: 1, 32>}, {pipeline_mode = #tpu.pipeline_mode<synchronous>, transform_indices = @transform_8, window_bounds = array<i64: 1, 32>}, {pipeline_mode = #tpu.pipeline_mode<synchronous>, transform_indices = @transform_9, window_bounds = array<i64: 32, 64>}, {pipeline_mode = #tpu.pipeline_mode<synchronous>, transform_indices = @transform_10, window_bounds = array<i64: 1, 64>}, {pipeline_mode = #tpu.pipeline_mode<synchronous>, transform_indices = @transform_11, window_bounds = array<i64: 64, 32>}, {pipeline_mode = #tpu.pipeline_mode<synchronous>, transform_indices = @transform_12, window_bounds = array<i64: 1, 32>}, {transform_indices = @transform_13, window_bounds = array<i64: 16, 32>}]} {
    %c0 = arith.constant 0 : index
    %c0_0 = arith.constant 0 : index
    %0 = vector.load %arg1[%c0, %c0_0] : memref<16x32xf32, #tpu.memory_space<vmem>>, vector<16x32xf32>
    %cst = arith.constant dense<0.000000e+00> : vector<16xf32>
    %1 = vector.multi_reduction <add>, %0, %cst [1] : vector<16x32xf32> to vector<16xf32>
    %2 = vector.shape_cast %1 : vector<16xf32> to vector<16x1xf32>
    %cst_1 = arith.constant 3.200000e+01 : f32
    %3 = vector.broadcast %cst_1 : f32 to vector<16x1xf32>
    %4 = arith.divf %2, %3 : vector<16x1xf32>
    %5 = vector.broadcast %4 : vector<16x1xf32> to vector<16x32xf32>
    %6 = arith.subf %0, %5 : vector<16x32xf32>
    %7 = arith.mulf %6, %6 : vector<16x32xf32>
    %cst_2 = arith.constant dense<0.000000e+00> : vector<16xf32>
    %8 = vector.multi_reduction <add>, %7, %cst_2 [1] : vector<16x32xf32> to vector<16xf32>
    %9 = vector.shape_cast %8 : vector<16xf32> to vector<16x1xf32>
    %cst_3 = arith.constant 3.200000e+01 : f32
    %10 = vector.broadcast %cst_3 : f32 to vector<16x1xf32>
    %11 = arith.divf %9, %10 : vector<16x1xf32>
    %12 = vector.broadcast %4 : vector<16x1xf32> to vector<16x32xf32>
    %13 = arith.subf %0, %12 : vector<16x32xf32>
    %cst_4 = arith.constant 9.99999974E-6 : f32
    %14 = vector.broadcast %cst_4 : f32 to vector<16x1xf32>
    %15 = arith.addf %11, %14 : vector<16x1xf32>
    %16 = math.rsqrt %15 : vector<16x1xf32>
    %17 = vector.broadcast %16 : vector<16x1xf32> to vector<16x32xf32>
    %18 = arith.mulf %13, %17 : vector<16x32xf32>
    %c0_5 = arith.constant 0 : index
    %c0_6 = arith.constant 0 : index
    %19 = vector.load %arg2[%c0_5, %c0_6] : memref<1x32xf32, #tpu.memory_space<vmem>>, vector<1x32xf32>
    %20 = vector.shape_cast %19 : vector<1x32xf32> to vector<32xf32>
    %21 = vector.shape_cast %20 : vector<32xf32> to vector<1x32xf32>
    %22 = vector.broadcast %21 : vector<1x32xf32> to vector<16x32xf32>
    %23 = arith.mulf %18, %22 : vector<16x32xf32>
    %c0_7 = arith.constant 0 : index
    %c0_8 = arith.constant 0 : index
    %24 = vector.load %arg3[%c0_7, %c0_8] : memref<1x32xf32, #tpu.memory_space<vmem>>, vector<1x32xf32>
    %25 = vector.shape_cast %24 : vector<1x32xf32> to vector<32xf32>
    %26 = vector.shape_cast %25 : vector<32xf32> to vector<1x32xf32>
    %27 = vector.broadcast %26 : vector<1x32xf32> to vector<16x32xf32>
    %28 = arith.addf %23, %27 : vector<16x32xf32>
    %29 = arith.truncf %28 : vector<16x32xf32> to vector<16x32xbf16>
    %c0_9 = arith.constant 0 : index
    %c0_10 = arith.constant 0 : index
    %30 = vector.load %arg4[%c0_9, %c0_10] : memref<32x96xbf16, #tpu.memory_space<vmem>>, vector<32x96xbf16>
    %cst_11 = arith.constant dense<0.000000e+00> : vector<16x96xf32>
    %31 = tpu.matmul %29, %30, %cst_11 {dimension_numbers = #tpu.dot_dimension_numbers<[1], [0], [0], [1], [0, 0, 1, 1], [], []>} : vector<16x32xbf16>, vector<32x96xbf16>, vector<16x96xf32> -> vector<16x96xf32>
    %c0_12 = arith.constant 0 : index
    %c0_13 = arith.constant 0 : index
    %32 = vector.load %arg5[%c0_12, %c0_13] : memref<1x96xf32, #tpu.memory_space<vmem>>, vector<1x96xf32>
    %33 = vector.shape_cast %32 : vector<1x96xf32> to vector<96xf32>
    %34 = vector.shape_cast %33 : vector<96xf32> to vector<1x96xf32>
    %35 = vector.broadcast %34 : vector<1x96xf32> to vector<16x96xf32>
    %36 = arith.addf %31, %35 : vector<16x96xf32>
    %37 = vector.shape_cast %36 : vector<16x96xf32> to vector<2x8x96xf32>
    %38 = vector.extract_strided_slice %37 {offsets = [0, 0, 0], sizes = [2, 8, 24], strides = [1, 1, 1]} : vector<2x8x96xf32> to vector<2x8x24xf32>
    %39 = arith.truncf %38 : vector<2x8x24xf32> to vector<2x8x24xbf16>
    %40 = vector.extract_strided_slice %37 {offsets = [0, 0, 24], sizes = [2, 8, 24], strides = [1, 1, 1]} : vector<2x8x96xf32> to vector<2x8x24xf32>
    %41 = arith.truncf %40 : vector<2x8x24xf32> to vector<2x8x24xbf16>
    %42 = vector.extract_strided_slice %37 {offsets = [0, 0, 48], sizes = [2, 8, 24], strides = [1, 1, 1]} : vector<2x8x96xf32> to vector<2x8x24xf32>
    %43 = arith.truncf %42 : vector<2x8x24xf32> to vector<2x8x24xbf16>
    %44 = vector.extract_strided_slice %37 {offsets = [0, 0, 72], sizes = [2, 8, 24], strides = [1, 1, 1]} : vector<2x8x96xf32> to vector<2x8x24xf32>
    %45 = arith.truncf %44 : vector<2x8x24xf32> to vector<2x8x24xbf16>
    %46 = tpu.concatenate %39, %41, %43, %45 in 0 : vector<2x8x24xbf16>, vector<2x8x24xbf16>, vector<2x8x24xbf16>, vector<2x8x24xbf16> -> vector<8x8x24xbf16>
    %47 = vector.extract_strided_slice %46 {offsets = [0, 0, 0], sizes = [8, 8, 8], strides = [1, 1, 1]} : vector<8x8x24xbf16> to vector<8x8x8xbf16>
    %48 = vector.extract_strided_slice %46 {offsets = [0, 0, 8], sizes = [8, 8, 8], strides = [1, 1, 1]} : vector<8x8x24xbf16> to vector<8x8x8xbf16>
    %49 = vector.extract_strided_slice %46 {offsets = [0, 0, 16], sizes = [8, 8, 8], strides = [1, 1, 1]} : vector<8x8x24xbf16> to vector<8x8x8xbf16>
    %50 = tpu.iota {dimensions = array<i32: 0>} : vector<8x8xi32>
    %51 = tpu.iota {dimensions = array<i32: 1>} : vector<8x8xi32>
    %52 = arith.cmpi sgt, %51, %50 : vector<8x8xi32>
    "tpu.trace_start"() <{level = 10 : i32, message = "zld,zmd->zlm"}> : () -> ()
    %cst_14 = arith.constant dense<0.000000e+00> : vector<8x8x8xf32>
    %53 = tpu.matmul %47, %48, %cst_14 {dimension_numbers = #tpu.dot_dimension_numbers<[2], [2], [1], [1], [0, 0, 0, 1, 1, 1], [0], [0]>} : vector<8x8x8xbf16>, vector<8x8x8xbf16>, vector<8x8x8xf32> -> vector<8x8x8xf32>
    %cst_15 = arith.constant -1.000000e+30 : f32
    "tpu.trace_stop"() : () -> ()
    %54 = vector.shape_cast %52 : vector<8x8xi1> to vector<1x8x8xi1>
    %55 = vector.broadcast %54 : vector<1x8x8xi1> to vector<8x8x8xi1>
    %56 = vector.broadcast %cst_15 : f32 to vector<8x8x8xf32>
    %57 = arith.select %55, %56, %53 : vector<8x8x8xi1>, vector<8x8x8xf32>
    %cst_16 = arith.constant dense<0xFF800000> : vector<8x8xf32>
    %58 = vector.multi_reduction <maximumf>, %57, %cst_16 [2] : vector<8x8x8xf32> to vector<8x8xf32>
    %59 = vector.shape_cast %58 : vector<8x8xf32> to vector<8x8x1xf32>
    %60 = vector.broadcast %59 : vector<8x8x1xf32> to vector<8x8x8xf32>
    %61 = arith.subf %57, %60 : vector<8x8x8xf32>
    %62 = math.exp %61 : vector<8x8x8xf32>
    %cst_17 = arith.constant dense<0.000000e+00> : vector<8x8xf32>
    %63 = vector.multi_reduction <add>, %62, %cst_17 [2] : vector<8x8x8xf32> to vector<8x8xf32>
    %64 = vector.shape_cast %63 : vector<8x8xf32> to vector<8x8x1xf32>
    %65 = tpu.reciprocal %64 {approx = true} : vector<8x8x1xf32> -> vector<8x8x1xf32>
    %66 = vector.broadcast %65 : vector<8x8x1xf32> to vector<8x8x8xf32>
    %67 = arith.mulf %62, %66 : vector<8x8x8xf32>
    %68 = arith.truncf %67 : vector<8x8x8xf32> to vector<8x8x8xbf16>
    "tpu.trace_start"() <{level = 10 : i32, message = "zlm,zmd->zld"}> : () -> ()
    %cst_18 = arith.constant dense<0.000000e+00> : vector<8x8x8xf32>
    %69 = tpu.matmul %68, %49, %cst_18 {dimension_numbers = #tpu.dot_dimension_numbers<[2], [1], [1], [2], [0, 0, 0, 1, 1, 2], [0], [0]>} : vector<8x8x8xbf16>, vector<8x8x8xbf16>, vector<8x8x8xf32> -> vector<8x8x8xf32>
    "tpu.trace_stop"() : () -> ()
    %70 = vector.extract_strided_slice %69 {offsets = [0, 0, 0], sizes = [2, 8, 8], strides = [1, 1, 1]} : vector<8x8x8xf32> to vector<2x8x8xf32>
    %71 = vector.extract_strided_slice %69 {offsets = [2, 0, 0], sizes = [2, 8, 8], strides = [1, 1, 1]} : vector<8x8x8xf32> to vector<2x8x8xf32>
    %72 = vector.extract_strided_slice %69 {offsets = [4, 0, 0], sizes = [2, 8, 8], strides = [1, 1, 1]} : vector<8x8x8xf32> to vector<2x8x8xf32>
    %73 = vector.extract_strided_slice %69 {offsets = [6, 0, 0], sizes = [2, 8, 8], strides = [1, 1, 1]} : vector<8x8x8xf32> to vector<2x8x8xf32>
    %74 = tpu.concatenate %70, %71, %72, %73 in 2 : vector<2x8x8xf32>, vector<2x8x8xf32>, vector<2x8x8xf32>, vector<2x8x8xf32> -> vector<2x8x32xf32>
    %75 = vector.shape_cast %74 : vector<2x8x32xf32> to vector<16x32xf32>
    %76 = arith.truncf %75 : vector<16x32xf32> to vector<16x32xbf16>
    %c0_19 = arith.constant 0 : index
    %c0_20 = arith.constant 0 : index
    %77 = vector.load %arg6[%c0_19, %c0_20] : memref<32x32xbf16, #tpu.memory_space<vmem>>, vector<32x32xbf16>
    %cst_21 = arith.constant dense<0.000000e+00> : vector<16x32xf32>
    %78 = tpu.matmul %76, %77, %cst_21 {dimension_numbers = #tpu.dot_dimension_numbers<[1], [0], [0], [1], [0, 0, 1, 1], [], []>} : vector<16x32xbf16>, vector<32x32xbf16>, vector<16x32xf32> -> vector<16x32xf32>
    %c0_22 = arith.constant 0 : index
    %c0_23 = arith.constant 0 : index
    %79 = vector.load %arg7[%c0_22, %c0_23] : memref<1x32xf32, #tpu.memory_space<vmem>>, vector<1x32xf32>
    %80 = vector.shape_cast %79 : vector<1x32xf32> to vector<32xf32>
    %81 = vector.shape_cast %80 : vector<32xf32> to vector<1x32xf32>
    %82 = vector.broadcast %81 : vector<1x32xf32> to vector<16x32xf32>
    %83 = arith.addf %78, %82 : vector<16x32xf32>
    %84 = arith.addf %0, %83 : vector<16x32xf32>
    %cst_24 = arith.constant dense<0.000000e+00> : vector<16xf32>
    %85 = vector.multi_reduction <add>, %84, %cst_24 [1] : vector<16x32xf32> to vector<16xf32>
    %86 = vector.shape_cast %85 : vector<16xf32> to vector<16x1xf32>
    %cst_25 = arith.constant 3.200000e+01 : f32
    %87 = vector.broadcast %cst_25 : f32 to vector<16x1xf32>
    %88 = arith.divf %86, %87 : vector<16x1xf32>
    %89 = vector.broadcast %88 : vector<16x1xf32> to vector<16x32xf32>
    %90 = arith.subf %84, %89 : vector<16x32xf32>
    %91 = arith.mulf %90, %90 : vector<16x32xf32>
    %cst_26 = arith.constant dense<0.000000e+00> : vector<16xf32>
    %92 = vector.multi_reduction <add>, %91, %cst_26 [1] : vector<16x32xf32> to vector<16xf32>
    %93 = vector.shape_cast %92 : vector<16xf32> to vector<16x1xf32>
    %cst_27 = arith.constant 3.200000e+01 : f32
    %94 = vector.broadcast %cst_27 : f32 to vector<16x1xf32>
    %95 = arith.divf %93, %94 : vector<16x1xf32>
    %96 = vector.broadcast %88 : vector<16x1xf32> to vector<16x32xf32>
    %97 = arith.subf %84, %96 : vector<16x32xf32>
    %cst_28 = arith.constant 9.99999974E-6 : f32
    %98 = vector.broadcast %cst_28 : f32 to vector<16x1xf32>
    %99 = arith.addf %95, %98 : vector<16x1xf32>
    %100 = math.rsqrt %99 : vector<16x1xf32>
    %101 = vector.broadcast %100 : vector<16x1xf32> to vector<16x32xf32>
    %102 = arith.mulf %97, %101 : vector<16x32xf32>
    %c0_29 = arith.constant 0 : index
    %c0_30 = arith.constant 0 : index
    %103 = vector.load %arg8[%c0_29, %c0_30] : memref<1x32xf32, #tpu.memory_space<vmem>>, vector<1x32xf32>
    %104 = vector.shape_cast %103 : vector<1x32xf32> to vector<32xf32>
    %105 = vector.shape_cast %104 : vector<32xf32> to vector<1x32xf32>
    %106 = vector.broadcast %105 : vector<1x32xf32> to vector<16x32xf32>
    %107 = arith.mulf %102, %106 : vector<16x32xf32>
    %c0_31 = arith.constant 0 : index
    %c0_32 = arith.constant 0 : index
    %108 = vector.load %arg9[%c0_31, %c0_32] : memref<1x32xf32, #tpu.memory_space<vmem>>, vector<1x32xf32>
    %109 = vector.shape_cast %108 : vector<1x32xf32> to vector<32xf32>
    %110 = vector.shape_cast %109 : vector<32xf32> to vector<1x32xf32>
    %111 = vector.broadcast %110 : vector<1x32xf32> to vector<16x32xf32>
    %112 = arith.addf %107, %111 : vector<16x32xf32>
    %113 = arith.truncf %112 : vector<16x32xf32> to vector<16x32xbf16>
    %cst_33 = arith.constant 0.000000e+00 : f32
    %114 = vector.broadcast %cst_33 : f32 to vector<16x32xf32>
    %c0_34 = arith.constant 0 : index
    %c0_35 = arith.constant 0 : index
    %115 = vector.load %arg10[%c0_34, %c0_35] : memref<32x64xbf16, #tpu.memory_space<vmem>>, vector<32x64xbf16>
    %cst_36 = arith.constant dense<0.000000e+00> : vector<16x64xf32>
    %116 = tpu.matmul %113, %115, %cst_36 {dimension_numbers = #tpu.dot_dimension_numbers<[1], [0], [0], [1], [0, 0, 1, 1], [], []>} : vector<16x32xbf16>, vector<32x64xbf16>, vector<16x64xf32> -> vector<16x64xf32>
    %c0_37 = arith.constant 0 : index
    %c0_38 = arith.constant 0 : index
    %117 = vector.load %arg11[%c0_37, %c0_38] : memref<1x64xf32, #tpu.memory_space<vmem>>, vector<1x64xf32>
    %118 = vector.shape_cast %117 : vector<1x64xf32> to vector<64xf32>
    %119 = vector.shape_cast %118 : vector<64xf32> to vector<1x64xf32>
    %120 = vector.broadcast %119 : vector<1x64xf32> to vector<16x64xf32>
    %121 = arith.addf %116, %120 : vector<16x64xf32>
    %cst_39 = arith.constant 1.702000e+00 : f32
    %122 = vector.broadcast %cst_39 : f32 to vector<16x64xf32>
    %123 = arith.mulf %122, %121 : vector<16x64xf32>
    %124 = arith.negf %123 : vector<16x64xf32>
    %125 = math.exp %124 : vector<16x64xf32>
    %cst_40 = arith.constant 1.000000e+00 : f32
    %126 = vector.broadcast %cst_40 : f32 to vector<16x64xf32>
    %127 = arith.addf %126, %125 : vector<16x64xf32>
    %128 = arith.divf %126, %127 : vector<16x64xf32>
    %129 = arith.mulf %121, %128 : vector<16x64xf32>
    %130 = arith.truncf %129 : vector<16x64xf32> to vector<16x64xbf16>
    %c0_41 = arith.constant 0 : index
    %c0_42 = arith.constant 0 : index
    %131 = vector.load %arg12[%c0_41, %c0_42] : memref<64x32xbf16, #tpu.memory_space<vmem>>, vector<64x32xbf16>
    %cst_43 = arith.constant dense<0.000000e+00> : vector<16x32xf32>
    %132 = tpu.matmul %130, %131, %cst_43 {dimension_numbers = #tpu.dot_dimension_numbers<[1], [0], [0], [1], [0, 0, 1, 1], [], []>} : vector<16x64xbf16>, vector<64x32xbf16>, vector<16x32xf32> -> vector<16x32xf32>
    %133 = arith.addf %114, %132 : vector<16x32xf32>
    %c0_44 = arith.constant 0 : index
    %c0_45 = arith.constant 0 : index
    %134 = vector.load %arg13[%c0_44, %c0_45] : memref<1x32xf32, #tpu.memory_space<vmem>>, vector<1x32xf32>
    %135 = vector.shape_cast %134 : vector<1x32xf32> to vector<32xf32>
    %136 = vector.shape_cast %135 : vector<32xf32> to vector<1x32xf32>
    %137 = vector.broadcast %136 : vector<1x32xf32> to vector<16x32xf32>
    %138 = arith.addf %133, %137 : vector<16x32xf32>
    %139 = arith.addf %84, %138 : vector<16x32xf32>
    %c0_46 = arith.constant 0 : index
    %c0_47 = arith.constant 0 : index
    %140 = vector.load %arg14[%c0_46, %c0_47] : memref<16x32xf32, #tpu.memory_space<vmem>>, vector<16x32xf32>
    tpu.vector_store %arg14[%c0_46, %c0_47], %139 {strides = array<i32>} : memref<16x32xf32, #tpu.memory_space<vmem>>, vector<16x32xf32>,
    return
  }
  func.func @transform_0(%arg0: i32) -> (i32, i32) {
    %c0_i32 = arith.constant 0 : i32
    %c0_i32_0 = arith.constant 0 : i32
    return %arg0, %c0_i32 : i32, i32
  }
  func.func @transform_1(%arg0: i32) -> (i32, i32) {
    %c0_i32 = arith.constant 0 : i32
    %c0_i32_0 = arith.constant 0 : i32
    %c0_i32_1 = arith.constant 0 : i32
    return %c0_i32, %c0_i32_0 : i32, i32
  }
  func.func @transform_2(%arg0: i32) -> (i32, i32) {
    %c0_i32 = arith.constant 0 : i32
    %c0_i32_0 = arith.constant 0 : i32
    %c0_i32_1 = arith.constant 0 : i32
    return %c0_i32, %c0_i32_0 : i32, i32
  }
  func.func @transform_3(%arg0: i32) -> (i32, i32) {
    %c0_i32 = arith.constant 0 : i32
    %c0_i32_0 = arith.constant 0 : i32
    %c0_i32_1 = arith.constant 0 : i32
    return %c0_i32, %c0_i32_0 : i32, i32
  }
  func.func @transform_4(%arg0: i32) -> (i32, i32) {
    %c0_i32 = arith.constant 0 : i32
    %c0_i32_0 = arith.constant 0 : i32
    %c0_i32_1 = arith.constant 0 : i32
    return %c0_i32, %c0_i32_0 : i32, i32
  }
  func.func @transform_5(%arg0: i32) -> (i32, i32) {
    %c0_i32 = arith.constant 0 : i32
    %c0_i32_0 = arith.constant 0 : i32
    %c0_i32_1 = arith.constant 0 : i32
    return %c0_i32, %c0_i32_0 : i32, i32
  }
  func.func @transform_6(%arg0: i32) -> (i32, i32) {
    %c0_i32 = arith.constant 0 : i32
    %c0_i32_0 = arith.constant 0 : i32
    %c0_i32_1 = arith.constant 0 : i32
    return %c0_i32, %c0_i32_0 : i32, i32
  }
  func.func @transform_7(%arg0: i32) -> (i32, i32) {
    %c0_i32 = arith.constant 0 : i32
    %c0_i32_0 = arith.constant 0 : i32
    %c0_i32_1 = arith.constant 0 : i32
    return %c0_i32, %c0_i32_0 : i32, i32
  }
  func.func @transform_8(%arg0: i32) -> (i32, i32) {
    %c0_i32 = arith.constant 0 : i32
    %c0_i32_0 = arith.constant 0 : i32
    %c0_i32_1 = arith.constant 0 : i32
    return %c0_i32, %c0_i32_0 : i32, i32
  }
  func.func @transform_9(%arg0: i32) -> (i32, i32) {
    %c0_i32 = arith.constant 0 : i32
    %c0_i32_0 = arith.constant 0 : i32
    %c0_i32_1 = arith.constant 0 : i32
    return %c0_i32, %c0_i32_0 : i32, i32
  }
  func.func @transform_10(%arg0: i32) -> (i32, i32) {
    %c0_i32 = arith.constant 0 : i32
    %c0_i32_0 = arith.constant 0 : i32
    %c0_i32_1 = arith.constant 0 : i32
    return %c0_i32, %c0_i32_0 : i32, i32
  }
  func.func @transform_11(%arg0: i32) -> (i32, i32) {
    %c0_i32 = arith.constant 0 : i32
    %c0_i32_0 = arith.constant 0 : i32
    %c0_i32_1 = arith.constant 0 : i32
    return %c0_i32, %c0_i32_0 : i32, i32
  }
  func.func @transform_12(%arg0: i32) -> (i32, i32) {
    %c0_i32 = arith.constant 0 : i32
    %c0_i32_0 = arith.constant 0 : i32
    %c0_i32_1 = arith.constant 0 : i32
    return %c0_i32, %c0_i32_0 : i32, i32
  }
  func.func @transform_13(%arg0: i32) -> (i32, i32) {
    %c0_i32 = arith.constant 0 : i32
    %c0_i32_0 = arith.constant 0 : i32
    return %arg0, %c0_i32 : i32, i32
  }
}

</mosaic_0001>

<bundles_post_ra>
// kernel: tpu_custom_call.1
= control target key start
LH: loop header
LB: loop body
LE: loop exit
PB: predicated region body
PF: predicated region fallthrough
CT: control target
= control target key end

     0   :  { %18 = vsyncpa [#allocation3], 0  ;;  %s1486_s0 = inlined_call_operand.vmem [shape: f32[16,32], index: 0, kind: input, shape index: {}]   ;;  %s1487_s1 = inlined_call_operand.hbm [shape: f32[1,32], index: 1, kind: input, shape index: {}]   ;;  %s1488_s2 = inlined_call_operand.vmem [shape: f32[1,32], index: 2, kind: input, shape index: {}]   ;;  %s1489_s3 = inlined_call_operand.vmem [shape: bf16[32,96], index: 3, kind: input, shape index: {}]   ;;  %s1490_s4 = inlined_call_operand.vmem [shape: f32[1,96], index: 4, kind: input, shape index: {}]   ;;  %s1491_s5 = inlined_call_operand.vmem [shape: bf16[32,32], index: 5, kind: input, shape index: {}]   ;;  %s1492_s6 = inlined_call_operand.vmem [shape: f32[1,32], index: 6, kind: input, shape index: {}]   ;;  %s1493_s7 = inlined_call_operand.vmem [shape: f32[1,32], index: 7, kind: input, shape index: {}]   ;;  %s1494_s8 = inlined_call_operand.vmem [shape: f32[1,32], index: 8, kind: input, shape index: {}]   ;;  %s1495_s9 = inlined_call_operand.hbm [shape: bf16[32,64], index: 9, kind: input, shape index: {}]   ;;  %s1496_s10 = inlined_call_operand.vmem [shape: f32[1,64], index: 10, kind: input, shape index: {}]   ;;  %s1497_s11 = inlined_call_operand.vmem [shape: bf16[64,32], index: 11, kind: input, shape index: {}]   ;;  %s1498_s12 = inlined_call_operand.vmem [shape: f32[1,32], index: 12, kind: input, shape index: {}]   ;;  %s1499_s13 = inlined_call_operand.hbm [shape: f32[16,32], index: 13, kind: output, shape index: {}]  }
   0x1   :  { %19 = vsyncpa [#allocation6], 0 }
   0x2   :  { %20 = vsyncpa [#allocation4], 0  ;;  %s28_s27 = sshll.u32 %s1487_s1, 4  ;;  %s1186_s28 = smov [#allocation2]   ;;  %s29_s27 = int_to_ptr.hbm [resolvable:$true] %s28_s27 }
   0x3   :  { %s30_s29 = sshll.u32 %s1186_s28, 4  ;;  %s52_s15 = sshll.u32 %s1495_s9, 4  ;;  %s31_s29 = int_to_ptr.vmem [resolvable:$true] %s30_s29  ;;  %s53_s15 = int_to_ptr.hbm [resolvable:$true] %s52_s15 }
   0x4   :  { %33 = dma.hbm_to_vmem [thread:$0]  %s29_s27, 16, %s31_s29, [#allocation3]  }
   0x5   :  { %s1187_s16 = smov [#allocation5]   ;;  %s1188_s18 = smov 64  }
   0x6   :  { %s54_s17 = sshll.u32 %s1187_s16, 4  ;;  %s1189_s19 = smov 4   ;;  %s55_s17 = int_to_ptr.vmem [resolvable:$true] %s54_s17 }
   0x7   :  { %60 = dma.hbm_to_vmem [thread:$0]  %s53_s15, 256, %s55_s17, [#allocation6], %s1188_s18, %s1188_s18, %s1189_s19  }
   0x8   :  { %1180 = dma.done.wait [#allocation3], 16  }
   0x9   :  { %1181 = vsyncadd [#allocation3], 4294967280 }
   0xa   :  { %1182 = dma.done.wait [#allocation6], 256  }
   0xb   :  { %1183 = vsyncadd [#allocation6], 4294967040  ;;  %vm78_vm0 = vcmask 261120   ;;  %v1280_v0 = vld [vmem:[%s1486_s0] sm:$0xff]  ;;  %v1287_v2 = vld [vmem:[%s1486_s0 + $0x8] sm:$0xff]  ;;  %v1190_v4 = vmov 32.0  }
   0xc   :  { %v79_v1 = vsel %vm78_vm0, %v1280_v0, 0.0  ;;  %v82_v3 = vsel %vm78_vm0, %v1287_v2, 0.0  ;;  %1058 = vrcp.f32 %v1190_v4  ;;  %v1011_v21 = vld [vmem:[%s1489_s3 + $0x8] sm:$0xff]  ;;  %v1010_v23 = vld [vmem:[%s1489_s3] sm:$0xff]  ;;  %s1191_s28 = smov 56   ;;  %s1192_s29 = smov 104  }
   0xd   :  { %80 = vadd.xlane.f32.xlu0 %v79_v1  ;;  %172 = vmatpush.bf16.msra.mxu0 %v1011_v21  ;;  %v1050_v42 = vld [vmem:[#allocation2] ss:$0 sm:$0xff]  ;;  %s1194_s30 = smov 120   ;;  %vm205_vm8 = vcmask 64512   ;;  %vm497_vm9 = vcmask 1043456   ;;  %s1196_s14 = smov 8  }
   0xe   :  { %v1051_v47 = vld [vmem:[%s1488_s2] ss:$0 sm:$0xff]  ;;  %s1193_s2 = smov 80   ;;  %s1197_s15 = smov 24   ;;  %vm687_vm11 = vcmask 130048   ;;  %vm690_vm12 = vcmask 195584  }
   0xf   :  { %v1052_v52 = vld [vmem:[%s1490_s4] ss:$0 sm:$0xff]  ;;  %s1195_s4 = smov 112   ;;  %s1198_s16 = smov 16  }
  0x11   :  { %173 = vmatpush.bf16.msra.mxu0 %v1010_v23 }
  0x12   :  { %v1059_v5 = vpop.eup %1058 }
  0x13   :  { %v86_v6 = vmul.f32 32.0, %v1059_v5  ;;  %vm90_vm1 = vweird.f32 %v1059_v5 }
  0x15   :  { %83 = vadd.xlane.f32.xlu0 %v82_v3  ;;  %v87_v7 = vsub.f32 1.0, %v86_v6 }
  0x17   :  { %v88_v8 = vmul.f32 %v1059_v5, %v87_v7 }
  0x19   :  { %v89_v9 = vadd.f32 %v1059_v5, %v88_v8 }
  0x1b   :  { %v1291_v10 = vsel %vm90_vm1, %v1059_v5, %v89_v9 }
  0x80   :  { %v81_v11 = vpop.xlane.xlu0 %80 }
  0x81   :  { %v92_v12 = vmul.f32 %v1291_v10, %v81_v11 }
  0x83   :  { %v94_v13 = vsub.f32 %v1280_v0, %v92_v12 }
  0x85   :  { %v96_v14 = vmul.f32 %v94_v13, %v94_v13 }
  0x87   :  { %v98_v15 = vsel %vm78_vm0, %v96_v14, 0.0 }
  0x88   :  { %99 = vadd.xlane.f32.xlu1 %v98_v15  ;;  %v84_v16 = vpop.xlane.xlu0 %83 }
  0x89   :  { %v93_v17 = vmul.f32 %v1291_v10, %v84_v16 }
  0x8b   :  { %v95_v18 = vsub.f32 %v1287_v2, %v93_v17 }
  0x8d   :  { %v97_v19 = vmul.f32 %v95_v18, %v95_v18 }
  0x8f   :  { %v101_v20 = vsel %vm78_vm0, %v97_v19, 0.0 }
  0x90   :  { %102 = vadd.xlane.f32.xlu1 %v101_v20 }
  0xfb   :  { %v100_v22 = vpop.xlane.xlu1 %99 }
  0xfc   :  { %v104_v24 = vmul.f32 %v100_v22, %v1291_v10 }
  0xfe   :  { %v106_v25 = vadd.f32 1e-05, %v104_v24 }
 0x100   :  { %1060 = vrsqrt.f32 %v106_v25  ;;  %vm114_vm3 = vweird.f32 %v106_v25 }
 0x103   :  { %v103_v26 = vpop.xlane.xlu1 %102 }
 0x104   :  { %v105_v27 = vmul.f32 %v103_v26, %v1291_v10 }
 0x106   :  { %v1061_v28 = vpop.eup %1060  ;;  %v107_v29 = vadd.f32 1e-05, %v105_v27 }
 0x107   :  { %v109_v30 = vmul.f32 %v1061_v28, %v106_v25  ;;  %vm115_vm2 = vweird.f32 %v1061_v28 }
 0x108   :  { %1062 = vrsqrt.f32 %v107_v29  ;;  %vm116_vm4 = vmor %vm114_vm3, %vm115_vm2  ;;  %vm124_vm6 = vweird.f32 %v107_v29 }
 0x109   :  { %v110_v31 = vmul.f32 %v1061_v28, %v109_v30 }
 0x10b   :  { %v111_v32 = vmul.f32 0.5, %v110_v31 }
 0x10d   :  { %v112_v33 = vsub.f32 1.5, %v111_v32 }
 0x10e   :  { %v1063_v34 = vpop.eup %1062 }
 0x10f   :  { %v113_v35 = vmul.f32 %v1061_v28, %v112_v33  ;;  %v119_v36 = vmul.f32 %v1063_v34, %v107_v29  ;;  %vm125_vm5 = vweird.f32 %v1063_v34 }
 0x110   :  { %vm126_vm7 = vmor %vm124_vm6, %vm125_vm5 }
 0x111   :  { %v120_v37 = vmul.f32 %v1063_v34, %v119_v36  ;;  %v117_v38 = vsel %vm116_vm4, %v1061_v28, %v113_v35 }
 0x112   :  { %v128_v41 = vmul.f32 %v117_v38, %v94_v13 }
 0x113   :  { %v121_v39 = vmul.f32 0.5, %v120_v37 }
 0x114   :  { %v134_v46 = vmul.f32 %v1050_v42, %v128_v41 }
 0x115   :  { %v122_v40 = vsub.f32 1.5, %v121_v39 }
 0x116   :  { %v140_v49 = vadd.f32 %v1051_v47, %v134_v46 }
 0x117   :  { %v123_v43 = vmul.f32 %v1063_v34, %v122_v40  ;;  %v196_v40 = vlaneseq }
 0x119   :  { %v127_v44 = vsel %vm126_vm7, %v1063_v34, %v123_v43  ;;  %v197_v41 = vshrl.u32 %v196_v40, 7 }
 0x11a   :  { %v129_v45 = vmul.f32 %v127_v44, %v95_v18 }
 0x11c   :  { %v135_v48 = vmul.f32 %v1050_v42, %v129_v45  ;;  %v199_v42 = vand.u32 127, %v196_v40 }
 0x11e   :  { %v141_v50 = vadd.f32 %v1051_v47, %v135_v48  ;;  %vm1359_vm10 = vcmp.gt.s32.totalorder %v199_v42, %v197_v41 }
 0x120   :  { %v142_v51 = vpack.c.bf16 %v141_v50, %v140_v49 }
 0x122   :  { %956 = vmatmul.msk.bf16.vlgmr.msra.gmra.mxu0 %vm78_vm0, %v142_v51 }
 0x19f   :  { %v175_v53 = vpop.f32.mrf.mxu0 }
 0x1a0   :  { %v176_v54 = vadd.f32 %v1052_v52, %v175_v53 }
 0x1a2   :  { %v180_v55 = vpack.c.bf16 %v176_v54, %v176_v54 }
 0x1a4   :  { %192 = vrot.lane.b32.xlu1 %v180_v55, %s1191_s28  ;;  %184 = vrot.lane.b32.xlu2 %v180_v55, %s1192_s29  ;;  %v201_v61 = vunpack.c.l.b16 %v180_v55 }
 0x1a6   :  { %v202_v62 = vpack.c.b16 %v201_v61, %v201_v61 }
 0x1a7   :  { %v177_v56 = vpop.f32.mrf.mxu0 }
 0x1a8   :  { %v178_v57 = vadd.f32 %v1052_v52, %v177_v56 }
 0x1aa   :  { %v181_v58 = vpack.c.bf16 %v178_v57, %v178_v57 }
 0x1ac   :  { %190 = vrot.lane.b32.xlu0 %v181_v58, %s1193_s2  ;;  %186 = vrot.lane.b32.xlu2 %v181_v58, %s1192_s29  ;;  %v225_v59 = vunpack.c.l.b16 %v181_v58  ;;  %s1199_s29 = smov [#allocation7]  }
 0x1ae   :  { %v226_v60 = vpack.c.b16 %v225_v59, %v225_v59 }
 0x1b4   :  { %188 = vrot.lane.b32.xlu2 %v180_v55, %s1193_s2  ;;  %s932_s2 = sshll.u32 %s1199_s29, 4  ;;  %s933_s2 = int_to_ptr.vmem [resolvable:$true] %s932_s2 }
 0x1bc   :  { %194 = vrot.lane.b32.xlu2 %v181_v58, %s1191_s28 }
 0x1c4   :  { %227 = vrot.lane.b32.xlu2 %v226_v60, %s1194_s30 }
 0x1cc   :  { %203 = vrot.lane.b32.xlu2 %v202_v62, %s1194_s30 }
 0x1fe   :  { %v185_v63 = vpop.permute.xlu2 %184 }
 0x1ff   :  { %v248_v1 = vunpack.c.l.b16 %v185_v63 }
 0x201   :  { %v249_v3 = vpack.c.b16 %v248_v1, %v248_v1 }
 0x203   :  { %250 = vrot.lane.b32.xlu0 %v249_v3, %s1194_s30 }
 0x206   :  { %v187_v4 = vpop.permute.xlu2 %186 }
 0x207   :  { %v271_v5 = vunpack.c.l.b16 %v187_v4 }
 0x209   :  { %v1317_v6 = vpack.c.b16 %v271_v5, %v271_v5 }
 0x20b   :  { %273 = vrot.lane.b32.xlu1 %v1317_v6, %s1194_s30 }
 0x20e   :  { %v189_v7 = vpop.permute.xlu2 %188 }
 0x20f   :  { %v294_v8 = vunpack.c.l.b16 %v189_v7 }
 0x211   :  { %v1321_v9 = vpack.c.b16 %v294_v8, %v294_v8 }
 0x213   :  { %296 = vrot.lane.b32.xlu1 %v1321_v9, %s1194_s30 }
 0x216   :  { %v193_v11 = vpop.permute.xlu1 %192  ;;  %v195_v12 = vpop.permute.xlu2 %194 }
 0x217   :  { %v340_v13 = vunpack.c.l.b16 %v193_v11  ;;  %v363_v20 = vunpack.c.l.b16 %v195_v12 }
 0x219   :  { %v1325_v14 = vpack.c.b16 %v340_v13, %v340_v13  ;;  %v1338_v23 = vpack.c.b16 %v363_v20, %v363_v20 }
 0x21b   :  { %535 = vrot.lane.b32.xlu1 %v249_v3, %s1195_s4  ;;  %342 = vrot.lane.b32.xlu2 %v1325_v14, %s1194_s30 }
 0x21e   :  { %v191_v15 = vpop.permute.xlu0 %190  ;;  %v228_v16 = vpop.permute.xlu2 %227 }
 0x21f   :  { %v317_v17 = vunpack.c.l.b16 %v191_v15  ;;  %v233_v18 = vsel %vm205_vm8, %v228_v16, 0 }
 0x220   :  { %242 = vmatpush.bf16.xpose.msra.mxu2 %v233_v18 }
 0x221   :  { %v1331_v19 = vpack.c.b16 %v317_v17, %v317_v17 }
 0x223   :  { %319 = vrot.lane.b32.xlu0 %v1331_v19, %s1194_s30  ;;  %514 = vrot.lane.b32.xlu2 %v226_v60, %s1195_s4 }
 0x226   :  { %v204_v21 = vpop.permute.xlu2 %203 }
 0x227   :  { %958 = vmatmul.msk.bf16.vlgmr.msra.gmra.mxu2 %vm205_vm8, %v181_v58  ;;  %v210_v22 = vsel %vm205_vm8, %v204_v21, 0 }
 0x228   :  { %219 = vmatpush.bf16.xpose.msra.mxu1 %v210_v22 }
 0x22b   :  { %365 = vrot.lane.b32.xlu0 %v1338_v23, %s1194_s30 }
 0x22f   :  { %957 = vmatmul.msk.bf16.vlgmr.msra.gmra.mxu1 %vm205_vm8, %v180_v55 }
 0x233   :  { %492 = vrot.lane.b32.xlu0 %v202_v62, %s1195_s4 }
 0x275   :  { %v251_v24 = vpop.permute.xlu0 %250  ;;  %v343_v25 = vpop.permute.xlu2 %342 }
 0x276   :  { %v256_v26 = vsel %vm205_vm8, %v251_v24, 0  ;;  %v348_v27 = vsel %vm205_vm8, %v343_v25, 0 }
 0x277   :  { %265 = vmatpush.bf16.xpose.msra.mxu3 %v256_v26 }
 0x27d   :  { %v274_v28 = vpop.permute.xlu1 %273  ;;  %v515_v34 = vpop.permute.xlu2 %514 }
 0x27e   :  { %959 = vmatmul.msk.bf16.vlgmr.msra.gmra.mxu3 %vm205_vm8, %v185_v63  ;;  %v279_v29 = vsel %vm205_vm8, %v274_v28, 0  ;;  %v520_v37 = vsel %vm497_vm9, %v515_v34, 0 }
 0x27f   :  { %357 = vmatpush.bf16.xpose.msrb.mxu3 %v348_v27  ;;  %288 = vmatpush.bf16.xpose.msrb.mxu0 %v279_v29 }
 0x285   :  { %v297_v30 = vpop.permute.xlu1 %296 }
 0x286   :  { %960 = vmatmul.msk.bf16.vlgmr.msrb.gmra.mxu0 %vm205_vm8, %v187_v4  ;;  %v302_v31 = vsel %vm205_vm8, %v297_v30, 0 }
 0x287   :  { %311 = vmatpush.bf16.xpose.msrb.mxu1 %v302_v31 }
 0x28d   :  { %v536_v32 = vpop.permute.xlu1 %535 }
 0x28e   :  { %v541_v33 = vsel %vm497_vm9, %v536_v32, 0  ;;  %961 = vmatmul.msk.bf16.vlgmr.msrb.gmra.mxu1 %vm205_vm8, %v189_v7  ;;  %963 = vmatmul.msk.bf16.vlgmr.msrb.gmra.mxu3 %vm205_vm8, %v193_v11 }
 0x28f   :  { %550 = vmatpush.bf16.msra.mxu3 %v541_v33 }
 0x295   :  { %v320_v35 = vpop.permute.xlu0 %319 }
 0x296   :  { %v325_v36 = vsel %vm205_vm8, %v320_v35, 0 }
 0x297   :  { %334 = vmatpush.bf16.xpose.msrb.mxu2 %v325_v36 }
 0x29d   :  { %v366_v38 = vpop.permute.xlu0 %365 }
 0x29e   :  { %v371_v39 = vsel %vm205_vm8, %v366_v38, 0  ;;  %962 = vmatmul.msk.bf16.vlgmr.msrb.gmra.mxu2 %vm205_vm8, %v191_v15 }
 0x29f   :  { %529 = vmatpush.bf16.msra.mxu2 %v520_v37  ;;  %380 = vmatpush.bf16.xpose.msra.mxu0 %v371_v39 }
 0x2a5   :  { %v493_v43 = vpop.permute.xlu0 %492 }
 0x2a6   :  { %v499_v44 = vsel %vm497_vm9, %v493_v43, 0  ;;  %964 = vmatmul.msk.bf16.vlgmr.msra.gmra.mxu0 %vm205_vm8, %v195_v12 }
 0x2a7   :  { %508 = vmatpush.bf16.msra.mxu1 %v499_v44 }
 0x2aa   :  { %v244_v46 = vpop.f32.mrf.mxu2 }
 0x2ab   :  { %v389_v47 = vsel %vm1359_vm10, -1e+30, %v244_v46 }
 0x2ac   :  { %v221_v48 = vpop.f32.mrf.mxu1  ;;  %v399_v49 = vsel %vm205_vm8, %v389_v47, -inf }
 0x2ad   :  { %v388_v50 = vsel %vm1359_vm10, -1e+30, %v221_v48  ;;  %400 = vmax.xlane.f32.xlu2 %v399_v49 }
 0x2ae   :  { %v396_v51 = vsel %vm205_vm8, %v388_v50, -inf }
 0x2af   :  { %397 = vmax.xlane.f32.xlu0 %v396_v51 }
 0x2b2   :  { %v246_v52 = vpop.f32.mrf.mxu2 }
 0x2b4   :  { %v223_v53 = vpop.f32.mrf.mxu1 }
 0x301   :  { %v267_v54 = vpop.f32.mrf.mxu3 }
 0x302   :  { %v390_v55 = vsel %vm1359_vm10, -1e+30, %v267_v54 }
 0x303   :  { %v290_v56 = vpop.f32.mrf.mxu0  ;;  %v402_v57 = vsel %vm205_vm8, %v390_v55, -inf }
 0x304   :  { %403 = vmax.xlane.f32.xlu1 %v402_v57  ;;  %v391_v1 = vsel %vm1359_vm10, -1e+30, %v290_v56 }
 0x305   :  { %v405_v7 = vsel %vm205_vm8, %v391_v1, -inf }
 0x309   :  { %v269_v58 = vpop.f32.mrf.mxu3 }
 0x30b   :  { %v292_v59 = vpop.f32.mrf.mxu0  ;;  %v313_v60 = vpop.f32.mrf.mxu1 }
 0x30c   :  { %v392_v61 = vsel %vm1359_vm10, -1e+30, %v313_v60 }
 0x30d   :  { %v408_v62 = vsel %vm205_vm8, %v392_v61, -inf }
 0x30e   :  { %409 = vmax.xlane.f32.xlu2 %v408_v62 }
 0x311   :  { %v359_v63 = vpop.f32.mrf.mxu3 }
 0x312   :  { %v394_v3 = vsel %vm1359_vm10, -1e+30, %v359_v63 }
 0x313   :  { %v315_v4 = vpop.f32.mrf.mxu1  ;;  %v414_v5 = vsel %vm205_vm8, %v394_v3, -inf }
 0x314   :  { %415 = vmax.xlane.f32.xlu0 %v414_v5 }
 0x316   :  { %406 = vmax.xlane.f32.xlu2 %v405_v7 }
 0x319   :  { %v361_v8 = vpop.f32.mrf.mxu3 }
 0x320   :  { %v401_v11 = vpop.xlane.xlu2 %400 }
 0x321   :  { %v421_v12 = vsub.f32 %v389_v47, %v401_v11  ;;  %v336_v13 = vpop.f32.mrf.mxu2 }
 0x322   :  { %v398_v15 = vpop.xlane.xlu0 %397  ;;  %v393_v28 = vsel %vm1359_vm10, -1e+30, %v336_v13 }
 0x323   :  { %v430_v16 = vmul.f32 1.442695, %v421_v12  ;;  %v420_v17 = vsub.f32 %v388_v50, %v398_v15  ;;  %v382_v18 = vpop.f32.mrf.mxu0  ;;  %v411_v29 = vsel %vm205_vm8, %v393_v28, -inf }
 0x324   :  { %v395_v30 = vsel %vm1359_vm10, -1e+30, %v382_v18 }
 0x325   :  { %1064 = vpow2.f32 %v430_v16  ;;  %v428_v20 = vmul.f32 1.442695, %v420_v17  ;;  %v417_v31 = vsel %vm205_vm8, %v395_v30, -inf }
 0x327   :  { %1066 = vpow2.f32 %v428_v20 }
 0x329   :  { %v338_v21 = vpop.f32.mrf.mxu2 }
 0x32b   :  { %v1065_v22 = vpop.eup %1064  ;;  %v384_v24 = vpop.f32.mrf.mxu0 }
 0x32c   :  { %v447_v25 = vsel %vm205_vm8, %v1065_v22, 0.0 }
 0x32d   :  { %v1067_v26 = vpop.eup %1066  ;;  %448 = vadd.xlane.f32.xlu0 %v447_v25 }
 0x32e   :  { %556 = vrot.lane.b32.xlu2 %v1317_v6, %s1195_s4  ;;  %v444_v27 = vsel %vm205_vm8, %v1067_v26, 0.0 }
 0x32f   :  { %445 = vadd.xlane.f32.xlu1 %v444_v27 }
 0x337   :  { %412 = vmax.xlane.f32.xlu1 %v411_v29 }
 0x33f   :  { %418 = vmax.xlane.f32.xlu1 %v417_v31 }
 0x358   :  { %598 = vrot.lane.b32.xlu1 %v1331_v19, %s1195_s4 }
 0x377   :  { %v404_v32 = vpop.xlane.xlu1 %403 }
 0x378   :  { %v422_v34 = vsub.f32 %v390_v55, %v404_v32 }
 0x37a   :  { %v432_v36 = vmul.f32 1.442695, %v422_v34 }
 0x381   :  { %v410_v6 = vpop.xlane.xlu2 %409 }
 0x382   :  { %v424_v33 = vsub.f32 %v392_v61, %v410_v6 }
 0x384   :  { %v436_v35 = vmul.f32 1.442695, %v424_v33 }
 0x386   :  { %1068 = vpow2.f32 %v436_v35 }
 0x387   :  { %v416_v37 = vpop.xlane.xlu0 %415  ;;  %1070 = vpow2.f32 %v432_v36 }
 0x388   :  { %v426_v38 = vsub.f32 %v394_v3, %v416_v37 }
 0x389   :  { %v407_v39 = vpop.xlane.xlu2 %406 }
 0x38a   :  { %v440_v40 = vmul.f32 1.442695, %v426_v38  ;;  %v423_v41 = vsub.f32 %v391_v1, %v407_v39 }
 0x38c   :  { %v1393_v42 = vpop.eup %1068  ;;  %1072 = vpow2.f32 %v440_v40  ;;  %v434_v43 = vmul.f32 1.442695, %v423_v41 }
 0x38d   :  { %v456_v19 = vsel %vm205_vm8, %v1393_v42, 0.0  ;;  %v1071_v44 = vpop.eup %1070 }
 0x38e   :  { %1074 = vpow2.f32 %v434_v43  ;;  %457 = vadd.xlane.f32.xlu2 %v456_v19  ;;  %v450_v50 = vsel %vm205_vm8, %v1071_v44, 0.0 }
 0x391   :  { %v557_v45 = vpop.permute.xlu2 %556 }
 0x392   :  { %v1073_v46 = vpop.eup %1072  ;;  %v562_v47 = vsel %vm497_vm9, %v557_v45, 0 }
 0x393   :  { %571 = vmatpush.bf16.msrb.mxu0 %v562_v47  ;;  %v462_v48 = vsel %vm205_vm8, %v1073_v46, 0.0 }
 0x394   :  { %v1075_v49 = vpop.eup %1074  ;;  %463 = vadd.xlane.f32.xlu1 %v462_v48 }
 0x395   :  { %v453_v51 = vsel %vm205_vm8, %v1075_v49, 0.0 }
 0x396   :  { %451 = vadd.xlane.f32.xlu2 %v450_v50  ;;  %454 = vadd.xlane.f32.xlu0 %v453_v51 }
 0x3a0   :  { %v449_v52 = vpop.xlane.xlu0 %448 }
 0x3a1   :  { %1076 = vrcp.f32 %v449_v52 }
 0x3a2   :  { %v446_v53 = vpop.xlane.xlu1 %445 }
 0x3a3   :  { %1078 = vrcp.f32 %v446_v53 }
 0x3a7   :  { %v1077_v54 = vpop.eup %1076 }
 0x3a8   :  { %v477_v55 = vmul.f32 %v1077_v54, %v1065_v22 }
 0x3a9   :  { %v1079_v56 = vpop.eup %1078 }
 0x3aa   :  { %v485_v57 = vpack.c.bf16 %v477_v55, %v477_v55  ;;  %v476_v58 = vmul.f32 %v1079_v56, %v1067_v26  ;;  %v413_v59 = vpop.xlane.xlu1 %412 }
 0x3ab   :  { %v425_v60 = vsub.f32 %v393_v28, %v413_v59 }
 0x3ac   :  { %v484_v61 = vpack.c.bf16 %v476_v58, %v476_v58  ;;  %966 = vmatmul.msk.bf16.vlgmr.msra.gmra.mxu2 %vm205_vm8, %v485_v57 }
 0x3ad   :  { %v438_v62 = vmul.f32 1.442695, %v425_v60  ;;  %640 = vrot.lane.b32.xlu1 %v1338_v23, %s1195_s4  ;;  %v1013_v60 = vld [vmem:[%s1491_s5 + $0x8] sm:$0xff] }
 0x3ae   :  { %965 = vmatmul.msk.bf16.vlgmr.msra.gmra.mxu1 %vm205_vm8, %v484_v61  ;;  %619 = vrot.lane.b32.xlu2 %v1325_v14, %s1195_s4  ;;  %v1012_v61 = vld [vmem:[%s1491_s5] sm:$0xff] }
 0x3af   :  { %1080 = vpow2.f32 %v438_v62 }
 0x3b2   :  { %v419_v63 = vpop.xlane.xlu1 %418 }
 0x3b3   :  { %v427_v1 = vsub.f32 %v395_v30, %v419_v63 }
 0x3b5   :  { %v1081_v3 = vpop.eup %1080  ;;  %v442_v4 = vmul.f32 1.442695, %v427_v1 }
 0x3b6   :  { %v459_v5 = vsel %vm205_vm8, %v1081_v3, 0.0 }
 0x3b7   :  { %1082 = vpow2.f32 %v442_v4  ;;  %460 = vadd.xlane.f32.xlu0 %v459_v5 }
 0x3bd   :  { %v1083_v7 = vpop.eup %1082 }
 0x3be   :  { %v465_v8 = vsel %vm205_vm8, %v1083_v7, 0.0 }
 0x3bf   :  { %466 = vadd.xlane.f32.xlu0 %v465_v8 }
 0x3ca   :  { %v599_v11 = vpop.permute.xlu1 %598 }
 0x3cb   :  { %v604_v23 = vsel %vm497_vm9, %v599_v11, 0 }
 0x3cc   :  { %613 = vmatpush.bf16.msrb.mxu2 %v604_v23 }
 0x3d3   :  { %577 = vrot.lane.b32.xlu0 %v1321_v9, %s1195_s4 }
 0x401   :  { %v458_v14 = vpop.xlane.xlu2 %457 }
 0x407   :  { %v464_v24 = vpop.xlane.xlu1 %463 }
 0x409   :  { %v455_v12 = vpop.xlane.xlu0 %454  ;;  %v452_v13 = vpop.xlane.xlu2 %451 }
 0x40a   :  { %1084 = vrcp.f32 %v455_v12 }
 0x40b   :  { %1086 = vrcp.f32 %v452_v13 }
 0x40c   :  { %1088 = vrcp.f32 %v464_v24 }
 0x410   :  { %v1085_v15 = vpop.eup %1084 }
 0x411   :  { %v1087_v16 = vpop.eup %1086  ;;  %v479_v17 = vmul.f32 %v1085_v15, %v1075_v49  ;;  %v620_v18 = vpop.permute.xlu2 %619 }
 0x412   :  { %v478_v20 = vmul.f32 %v1087_v16, %v1071_v44  ;;  %v625_v21 = vsel %vm497_vm9, %v620_v18, 0  ;;  %v1089_v9 = vpop.eup %1088  ;;  %v1053_v18 = vld [vmem:[%s1492_s6] ss:$0 sm:$0xff] }
 0x413   :  { %v487_v22 = vpack.c.bf16 %v479_v17, %v479_v17  ;;  %634 = vmatpush.bf16.msrb.mxu3 %v625_v21  ;;  %v482_v27 = vmul.f32 %v1089_v9, %v1073_v46 }
 0x414   :  { %v486_v25 = vpack.c.bf16 %v478_v20, %v478_v20 }
 0x415   :  { %968 = vmatmul.msk.bf16.vlgmr.msrb.gmra.mxu0 %vm205_vm8, %v487_v22  ;;  %v490_v29 = vpack.c.bf16 %v482_v27, %v482_v27 }
 0x416   :  { %967 = vmatmul.msk.bf16.vlgmr.msra.gmra.mxu3 %vm205_vm8, %v486_v25 }
 0x41f   :  { %v641_v26 = vpop.permute.xlu1 %640 }
 0x420   :  { %v646_v28 = vsel %vm497_vm9, %v641_v26, 0 }
 0x421   :  { %655 = vmatpush.bf16.msra.mxu0 %v646_v28 }
 0x426   :  { %971 = vmatmul.msk.bf16.vlgmr.msrb.gmra.mxu3 %vm205_vm8, %v490_v29 }
 0x42a   :  { %v461_v30 = vpop.xlane.xlu0 %460 }
 0x42b   :  { %1090 = vrcp.f32 %v461_v30  ;;  %v510_v31 = vpop.f32.mrf.mxu1 }
 0x42f   :  { %v531_v32 = vpop.f32.mrf.mxu2 }
 0x431   :  { %v1091_v6 = vpop.eup %1090 }
 0x432   :  { %v481_v33 = vmul.f32 %v1091_v6, %v1081_v3  ;;  %v467_v34 = vpop.xlane.xlu0 %466 }
 0x433   :  { %1092 = vrcp.f32 %v467_v34  ;;  %v512_v35 = vpop.f32.mrf.mxu1 }
 0x434   :  { %v489_v36 = vpack.c.bf16 %v481_v33, %v481_v33  ;;  %1094 = vrcp.f32 %v458_v14  ;;  %v1015_v35 = vld [vmem:[#allocation5 + $0x8] sm:$0xff] }
 0x435   :  { %819 = vmatpush.bf16.msra.mxu2 %v1015_v35 }
 0x436   :  { %970 = vmatmul.msk.bf16.vlgmr.msrb.gmra.mxu2 %vm205_vm8, %v489_v36 }
 0x437   :  { %v533_v37 = vpop.f32.mrf.mxu2 }
 0x439   :  { %v1093_v38 = vpop.eup %1092 }
 0x43a   :  { %v483_v39 = vmul.f32 %v1093_v38, %v1083_v7  ;;  %v1095_v41 = vpop.eup %1094 }
 0x43b   :  { %v480_v43 = vmul.f32 %v1095_v41, %v1393_v42 }
 0x43c   :  { %v491_v40 = vpack.c.bf16 %v483_v39, %v483_v39  ;;  %v1014_v39 = vld [vmem:[#allocation5] sm:$0xff] }
 0x43d   :  { %v488_v45 = vpack.c.bf16 %v480_v43, %v480_v43  ;;  %820 = vmatpush.bf16.msra.mxu2 %v1014_v39 }
 0x43e   :  { %972 = vmatmul.msk.bf16.vlgmr.msra.gmra.mxu0 %vm205_vm8, %v491_v40 }
 0x445   :  { %v578_v19 = vpop.permute.xlu0 %577 }
 0x446   :  { %v583_v44 = vsel %vm497_vm9, %v578_v19, 0 }
 0x447   :  { %592 = vmatpush.bf16.msrb.mxu1 %v583_v44 }
 0x44a   :  { %969 = vmatmul.msk.bf16.vlgmr.msrb.gmra.mxu1 %vm205_vm8, %v488_v45 }
 0x44b   :  { %723 = vmatpush.bf16.msra.mxu1 %v1013_v60 }
 0x44f   :  { %724 = vmatpush.bf16.msra.mxu1 %v1012_v61 }
 0x492   :  { %v573_v46 = vpop.f32.mrf.mxu0 }
 0x499   :  { %v552_v47 = vpop.f32.mrf.mxu3 }
 0x49a   :  { %v1035_v48 = vpack.i.bf16 %v573_v46, %v552_v47  ;;  %v575_v49 = vpop.f32.mrf.mxu0 }
 0x49c   :  { %1036 = vrot.lane.b32.xlu0 %v1035_v48, %s1196_s14 }
 0x4a1   :  { %v554_v50 = vpop.f32.mrf.mxu3 }
 0x4a9   :  { %v636_v51 = vpop.f32.mrf.mxu3 }
 0x4b1   :  { %v638_v52 = vpop.f32.mrf.mxu3 }
 0x4b9   :  { %v615_v53 = vpop.f32.mrf.mxu2 }
 0x4bb   :  { %v657_v54 = vpop.f32.mrf.mxu0 }
 0x4bc   :  { %v1045_v42 = vpack.i.bf16 %v657_v54, %v636_v51 }
 0x4be   :  { %1046 = vrot.lane.b32.xlu1 %v1045_v42, %s1197_s15  ;;  %s934_s15 = sshll.u32 %s1499_s13, 4  ;;  %s935_s15 = int_to_ptr.hbm [resolvable:$true] %s934_s15 }
 0x4c1   :  { %v617_v55 = vpop.f32.mrf.mxu2 }
 0x4c3   :  { %v659_v56 = vpop.f32.mrf.mxu0 }
 0x4c7   :  { %v594_v57 = vpop.f32.mrf.mxu1 }
 0x4c8   :  { %v1040_v58 = vpack.i.bf16 %v615_v53, %v594_v57  ;;  %v1055_v57 = vld [vmem:[%s1494_s8] ss:$0 sm:$0xff] }
 0x4ca   :  { %1041 = vrot.lane.b32.xlu2 %v1040_v58, %s1198_s16 }
 0x4cf   :  { %v596_v59 = vpop.f32.mrf.mxu1 }
 0x50e   :  { %v1037_v62 = vpop.permute.xlu0 %1036 }
 0x50f   :  { %v1039_v1 = vunpack.i.h.bf16 %v1037_v62  ;;  %v1038_v3 = vunpack.i.l.bf16 %v1037_v62 }
 0x511   :  { %v686_v8 = vsel %vm205_vm8, %v531_v32, %v1039_v1  ;;  %v685_v11 = vsel %vm205_vm8, %v510_v31, %v1038_v3  ;;  %v1056_v1 = vld [vmem:[%s1496_s10] ss:$0 sm:$0xff]  ;;  %v1019_v3 = vld [vmem:[%s1497_s11 + $0x18] sm:$0xff] }
 0x512   :  { %914 = vmatpush.bf16.msra.mxu3 %v1019_v3 }
 0x524   :  { %v1042_v63 = vpop.permute.xlu2 %1041 }
 0x525   :  { %v1044_v4 = vunpack.i.h.bf16 %v1042_v63  ;;  %v1043_v5 = vunpack.i.l.bf16 %v1042_v63 }
 0x527   :  { %v689_v12 = vsel %vm687_vm11, %v686_v8, %v1044_v4  ;;  %v688_v13 = vsel %vm687_vm11, %v685_v11, %v1043_v5 }
 0x530   :  { %v1047_v7 = vpop.permute.xlu1 %1046 }
 0x531   :  { %v1049_v23 = vunpack.i.h.bf16 %v1047_v7  ;;  %v1048_v14 = vunpack.i.l.bf16 %v1047_v7  ;;  %v1018_v7 = vld [vmem:[%s1497_s11 + $0x10] sm:$0xff] }
 0x532   :  { %915 = vmatpush.bf16.msra.mxu3 %v1018_v7 }
 0x533   :  { %v691_v15 = vsel %vm690_vm12, %v688_v13, %v1048_v14  ;;  %v692_v16 = vsel %vm690_vm12, %v689_v12, %v1049_v23  ;;  %v1017_v23 = vld [vmem:[%s1497_s11 + $0x8] sm:$0xff]  ;;  %v1016_v13 = vld [vmem:[%s1497_s11] sm:$0xff]  ;;  %vm906_vm12 = vcmask 523264  }
 0x534   :  { %v693_v17 = vpack.c.bf16 %v692_v16, %v691_v15 }
 0x536   :  { %981 = vmatmul.msk.bf16.vlgmr.msra.gmra.mxu1 %vm78_vm0, %v693_v17  ;;  %916 = vmatpush.bf16.msra.mxu3 %v1017_v23 }
 0x53a   :  { %917 = vmatpush.bf16.msra.mxu3 %v1016_v13 }
 0x5b3   :  { %v726_v20 = vpop.f32.mrf.mxu1 }
 0x5b4   :  { %v727_v21 = vadd.f32 %v1053_v18, %v726_v20 }
 0x5b6   :  { %v1436_v22 = vadd.f32 %v727_v21, %v1280_v0 }
 0x5b8   :  { %v733_v24 = vsel %vm78_vm0, %v1436_v22, 0.0 }
 0x5b9   :  { %734 = vadd.xlane.f32.xlu0 %v733_v24 }
 0x5bb   :  { %v728_v25 = vpop.f32.mrf.mxu1 }
 0x5bc   :  { %v729_v9 = vadd.f32 %v1053_v18, %v728_v25 }
 0x5be   :  { %v1441_v26 = vadd.f32 %v729_v9, %v1287_v2 }
 0x5c0   :  { %v736_v27 = vsel %vm78_vm0, %v1441_v26, 0.0 }
 0x5c1   :  { %737 = vadd.xlane.f32.xlu2 %v736_v27 }
 0x62c   :  { %v735_v28 = vpop.xlane.xlu0 %734 }
 0x62d   :  { %v739_v29 = vmul.f32 %v735_v28, %v1291_v10 }
 0x62f   :  { %v741_v30 = vsub.f32 %v1436_v22, %v739_v29 }
 0x631   :  { %v743_v0 = vmul.f32 %v741_v30, %v741_v30 }
 0x633   :  { %v745_v31 = vsel %vm78_vm0, %v743_v0, 0.0 }
 0x634   :  { %v738_v32 = vpop.xlane.xlu2 %737  ;;  %746 = vadd.xlane.f32.xlu1 %v745_v31 }
 0x635   :  { %v740_v6 = vmul.f32 %v738_v32, %v1291_v10 }
 0x637   :  { %v742_v33 = vsub.f32 %v1441_v26, %v740_v6 }
 0x639   :  { %v744_v2 = vmul.f32 %v742_v33, %v742_v33 }
 0x63b   :  { %v748_v34 = vsel %vm78_vm0, %v744_v2, 0.0 }
 0x63c   :  { %749 = vadd.xlane.f32.xlu0 %v748_v34 }
 0x6a7   :  { %v747_v36 = vpop.xlane.xlu1 %746 }
 0x6a8   :  { %v751_v37 = vmul.f32 %v747_v36, %v1291_v10 }
 0x6aa   :  { %v753_v38 = vadd.f32 1e-05, %v751_v37 }
 0x6ac   :  { %1096 = vrsqrt.f32 %v753_v38  ;;  %vm761_vm14 = vweird.f32 %v753_v38 }
 0x6af   :  { %v750_v40 = vpop.xlane.xlu0 %749 }
 0x6b0   :  { %v752_v41 = vmul.f32 %v750_v40, %v1291_v10  ;;  %v1054_v10 = vld [vmem:[%s1493_s7] ss:$0 sm:$0xff] }
 0x6b2   :  { %v1097_v43 = vpop.eup %1096  ;;  %v754_v19 = vadd.f32 1e-05, %v752_v41 }
 0x6b3   :  { %v756_v44 = vmul.f32 %v1097_v43, %v753_v38  ;;  %vm762_vm13 = vweird.f32 %v1097_v43 }
 0x6b4   :  { %1098 = vrsqrt.f32 %v754_v19  ;;  %vm763_vm15 = vmor %vm761_vm14, %vm762_vm13  ;;  %vm771_vm2 = vweird.f32 %v754_v19 }
 0x6b5   :  { %v757_v45 = vmul.f32 %v1097_v43, %v756_v44  ;;  %v1057_v44 = vld [vmem:[%s1498_s12] ss:$0 sm:$0xff]  ;;  %s1200_s12 = smov 128  }
 0x6b7   :  { %v758_v46 = vmul.f32 0.5, %v757_v45 }
 0x6b9   :  { %v759_v47 = vsub.f32 1.5, %v758_v46 }
 0x6ba   :  { %v1099_v48 = vpop.eup %1098 }
 0x6bb   :  { %v760_v49 = vmul.f32 %v1097_v43, %v759_v47  ;;  %v766_v50 = vmul.f32 %v1099_v48, %v754_v19  ;;  %vm772_vm1 = vweird.f32 %v1099_v48 }
 0x6bc   :  { %vm773_vm3 = vmor %vm771_vm2, %vm772_vm1 }
 0x6bd   :  { %v767_v51 = vmul.f32 %v1099_v48, %v766_v50  ;;  %v764_v52 = vsel %vm763_vm15, %v1097_v43, %v760_v49 }
 0x6be   :  { %v775_v42 = vmul.f32 %v764_v52, %v741_v30 }
 0x6bf   :  { %v768_v53 = vmul.f32 0.5, %v767_v51 }
 0x6c0   :  { %v781_v58 = vmul.f32 %v1054_v10, %v775_v42 }
 0x6c1   :  { %v769_v54 = vsub.f32 1.5, %v768_v53 }
 0x6c2   :  { %v787_v61 = vadd.f32 %v1055_v57, %v781_v58 }
 0x6c3   :  { %v770_v55 = vmul.f32 %v1099_v48, %v769_v54 }
 0x6c5   :  { %v774_v56 = vsel %vm773_vm3, %v1099_v48, %v770_v55 }
 0x6c6   :  { %v776_v59 = vmul.f32 %v774_v56, %v742_v33 }
 0x6c8   :  { %v782_v60 = vmul.f32 %v1054_v10, %v776_v59 }
 0x6ca   :  { %v788_v62 = vadd.f32 %v1055_v57, %v782_v60 }
 0x6cc   :  { %v789_v63 = vpack.c.bf16 %v788_v62, %v787_v61 }
 0x6ce   :  { %990 = vmatmul.msk.bf16.vlgmr.msra.gmra.mxu2 %vm78_vm0, %v789_v63 }
 0x751   :  { %v822_v4 = vpop.f32.mrf.mxu2 }
 0x752   :  { %v823_v5 = vadd.f32 %v1056_v1, %v822_v4 }
 0x754   :  { %v991_v8 = vmul.f32 -1.702, %v823_v5 }
 0x756   :  { %v831_v11 = vmul.f32 1.442695, %v991_v8 }
 0x758   :  { %1100 = vpow2.f32 %v831_v11 }
 0x759   :  { %v824_v14 = vpop.f32.mrf.mxu2 }
 0x75a   :  { %v825_v12 = vadd.f32 %v1056_v1, %v824_v14 }
 0x75c   :  { %v992_v15 = vmul.f32 -1.702, %v825_v12 }
 0x75e   :  { %v1101_v16 = vpop.eup %1100  ;;  %v833_v17 = vmul.f32 1.442695, %v992_v15 }
 0x75f   :  { %v835_v18 = vadd.f32 1.0, %v1101_v16 }
 0x760   :  { %1102 = vpow2.f32 %v833_v17 }
 0x761   :  { %1104 = vrcp.f32 %v835_v18  ;;  %v848_v0 = vand.u32 2147483648, %v835_v18  ;;  %vm842_vm5 = vweird.f32 %v835_v18  ;;  %v846_v31 = vand.u32 2147483647, %v835_v18 }
 0x763   :  { %v849_v35 = vor.u32 1.1754944e-38, %v848_v0  ;;  %vm847_vm8 = vcmp.eq.f32.partialorder %v846_v31, 8.507059e+37 }
 0x766   :  { %v1103_v20 = vpop.eup %1102 }
 0x767   :  { %v1105_v21 = vpop.eup %1104  ;;  %v836_v24 = vadd.f32 1.0, %v1103_v20 }
 0x768   :  { %v838_v25 = vmul.f32 %v1105_v21, %v835_v18  ;;  %vm843_vm4 = vweird.f32 %v1105_v21 }
 0x769   :  { %1106 = vrcp.f32 %v836_v24  ;;  %vm844_vm6 = vmor %vm842_vm5, %vm843_vm4  ;;  %v863_v6 = vand.u32 2147483648, %v836_v24  ;;  %v861_v34 = vand.u32 2147483647, %v836_v24  ;;  %vm857_vm9 = vweird.f32 %v836_v24 }
 0x76a   :  { %v839_v9 = vsub.f32 1.0, %v838_v25 }
 0x76b   :  { %v864_v38 = vor.u32 1.1754944e-38, %v863_v6  ;;  %vm862_vm11 = vcmp.eq.f32.partialorder %v861_v34, 8.507059e+37 }
 0x76c   :  { %v840_v27 = vmul.f32 %v1105_v21, %v839_v9 }
 0x76e   :  { %v841_v29 = vadd.f32 %v1105_v21, %v840_v27 }
 0x76f   :  { %v1107_v28 = vpop.eup %1106 }
 0x770   :  { %v853_v30 = vmul.f32 %v1107_v28, %v836_v24  ;;  %v845_v33 = vsel %vm844_vm6, %v1105_v21, %v841_v29  ;;  %vm858_vm7 = vweird.f32 %v1107_v28 }
 0x771   :  { %v850_v37 = vsel %vm847_vm8, %v849_v35, %v845_v33  ;;  %vm859_vm10 = vmor %vm857_vm9, %vm858_vm7 }
 0x772   :  { %v854_v32 = vsub.f32 1.0, %v853_v30  ;;  %v867_v41 = vmul.f32 %v850_v37, %v823_v5 }
 0x774   :  { %v855_v2 = vmul.f32 %v1107_v28, %v854_v32 }
 0x776   :  { %v856_v36 = vadd.f32 %v1107_v28, %v855_v2 }
 0x778   :  { %v860_v39 = vsel %vm859_vm10, %v1107_v28, %v856_v36 }
 0x779   :  { %v865_v40 = vsel %vm862_vm11, %v864_v38, %v860_v39 }
 0x77a   :  { %v868_v43 = vmul.f32 %v865_v40, %v825_v12 }
 0x77c   :  { %v869_v19 = vpack.c.bf16 %v868_v43, %v867_v41 }
 0x77e   :  { %1009 = vmatmul.msk.bf16.vlgmr.msra.gmra.mxu3 %vm906_vm12, %v869_v19 }
 0x801   :  { %v919_v45 = vpop.f32.mrf.mxu3 }
 0x802   :  { %v920_v46 = vadd.f32 %v1057_v44, %v919_v45 }
 0x804   :  { %v924_v47 = vadd.f32 %v920_v46, %v1436_v22 }
 0x806   :  { %926 = vst.msk [vmem:[#allocation7] sm:$0xff] %vm78_vm0, %v924_v47 }
 0x809   :  { %v921_v48 = vpop.f32.mrf.mxu3 }
 0x80a   :  { %v922_v49 = vadd.f32 %v1057_v44, %v921_v48 }
 0x80c   :  { %v925_v50 = vadd.f32 %v922_v49, %v1441_v26 }
 0x80e   :  { %927 = vst.msk [vmem:[#allocation7 + $0x8] sm:$0xff] %vm78_vm0, %v925_v50 }
 0x80f   :  { %940 = dma.vmem_to_hbm [thread:$0]  %s933_s2, 256, %s935_s15, [#allocation4], %s1200_s12, %s1200_s12, %s1196_s14  }
 0x810   :  { %1184 = dma.done.wait [#allocation4], 256  }
 0x811   :  { %1185 = vsyncadd [#allocation4], 4294967040 }
 0x812   :  { %945 = vsyncpa [#allocation3], 1 }
 0x813   :  { %946 = vsyncpa [#allocation6], 1 }
 0x814   :  { %947 = vsyncpa [#allocation4], 1 }

</bundles_post_ra>
